<compile_context>
chip_gen: v5e
topology: v5e:2x2
jax: 0.10.0
libtpu: 0.0.40
codegen_flags: <defaults>
</compile_context>

<pallas_src>
import functools
import math

import jax
import jax.numpy as jnp
from jax.experimental import pallas as pl
from jax.experimental.pallas import tpu as pltpu

_LANES = 128
_DEFAULT_TILE_ROWS = 4096   # 4096*128*4B = 2 MiB per input buffer.
_NUM_SHARDS = 2             # leading 'parallel' grid axis (megacore).
_LN2 = math.log(2.0)


def _iou_bce_kernel(x_ref, t_ref, inter_ref, total_ref, bce_ref, *,
                    tiles_per_shard, total_tiles, last_rows,
                    needs_mask, has_phantom):
    i = pl.program_id(1)
    g = pl.program_id(0) * tiles_per_shard + i   # global tile index

    @pl.when(i == 0)
    def _init():
        inter_ref[...] = jnp.zeros_like(inter_ref)
        total_ref[...] = jnp.zeros_like(total_ref)
        bce_ref[...] = jnp.zeros_like(bce_ref)

    def _accumulate(x, t):
        # Stable log-sigmoid pieces (EUP exp + EUP log + EUP exp, no divide):
        #   m = max(x, 0);   lse = log(1 + exp(-|x|)),  -|x| = x - 2m
        #   log(1-p) = -(m + lse);   log(p) = x + log(1-p);   p = exp(log p)
        m = jnp.maximum(x, 0.0)
        lse = jnp.log(1.0 + jnp.exp(x - 2.0 * m))
        log_1mp = -(m + lse)
        log_p = x + log_1mp
        sig = jnp.exp(log_p)
        # F.binary_cross_entropy clamps each log term at -100; when the
        # probability saturates to exactly 1.0 in f32 it sees log(0) -> -100,
        # which the analytic log(1-p) alone would miss.
        log_p_c = jnp.maximum(log_p, -100.0)
        log_1mp_c = jnp.where(sig >= 1.0, -100.0, jnp.maximum(log_1mp, -100.0))
        # t*log(p) + (1-t)*log(1-p); BCE's leading '-' applied in the combine.
        bce_elem = log_1mp_c + t * (log_p_c - log_1mp_c)
        # Cheap sublane-axis partial sums into the resident (1, 128) output
        # accumulators; the cross-lane reduction happens once, outside.
        inter_ref[...] += jnp.sum(sig * t, axis=0, keepdims=True)
        total_ref[...] += jnp.sum(sig + t, axis=0, keepdims=True)
        bce_ref[...] += jnp.sum(bce_elem, axis=0, keepdims=True)

    if not needs_mask and not has_phantom:
        # Every tile of every shard is fully valid: no masks, no branches.
        _accumulate(x_ref[...].astype(jnp.float32),
                    t_ref[...].astype(jnp.float32))
    else:
        n_full = total_tiles - 1 if needs_mask else total_tiles

        @pl.when(g < n_full)
        def _full_tile():
            _accumulate(x_ref[...].astype(jnp.float32),
                        t_ref[...].astype(jnp.float32))

        if needs_mask:
            @pl.when(g == total_tiles - 1)
            def _ragged_tile():
                # Only the globally-last tile pays for the row mask.  Garbage
                # rows (unspecified data past the array end) become (x=0, t=0)
                # whose exact contribution is removed in the host combine.
                # Masking x AND t before any arithmetic also stops NaN/Inf
                # garbage from propagating.
                x = x_ref[...].astype(jnp.float32)
                t = t_ref[...].astype(jnp.float32)
                rows = jax.lax.broadcasted_iota(jnp.int32, x.shape, 0)
                keep = rows < last_rows
                _accumulate(jnp.where(keep, x, 0.0), jnp.where(keep, t, 0.0))
        # Phantom tiles (g >= total_tiles, only when the shard count does not
        # divide the tile count) skip accumulation entirely.


def iou_bce_loss(inputs, targets, smooth=1.0,
                 tile_rows=_DEFAULT_TILE_ROWS, num_shards=_NUM_SHARDS):
    """Pallas implementation of IoUBCELoss.forward(inputs, targets, smooth)."""
    x = inputs.reshape(-1)
    t = targets.reshape(-1)
    n = x.shape[0]

    rows_total = -(-n // _LANES)
    pad_elems = rows_total * _LANES - n          # 0..127
    if pad_elems:
        # Only when the flat size is not a multiple of 128 (the row-major
        # reshape below needs whole rows).  Prefer 128-divisible sizes
        # upstream to skip even this small-copy path.
        x = jnp.pad(x, (0, pad_elems))
        t = jnp.pad(t, (0, pad_elems))
    x2 = x.reshape(rows_total, _LANES)
    t2 = t.reshape(rows_total, _LANES)

    tile_rows = max(8, -(-int(tile_rows) // 8) * 8)      # sublane-aligned
    tr = tile_rows if rows_total > tile_rows else rows_total
    total_tiles = -(-rows_total // tr)
    last_rows = rows_total - (total_tiles - 1) * tr
    needs_mask = last_rows < tr

    shards = max(1, min(int(num_shards), total_tiles))
    tiles_per_shard = -(-total_tiles // shards)
    has_phantom = shards * tiles_per_shard > total_tiles

    # Elements accumulated as (x=0, t=0) that are not part of the real input:
    # the <128 zero-pad tail plus the masked garbage rows of the ragged tile.
    fake = pad_elems + (tr - last_rows) * _LANES

    kernel = functools.partial(
        _iou_bce_kernel,
        tiles_per_shard=tiles_per_shard, total_tiles=total_tiles,
        last_rows=last_rows, needs_mask=needs_mask, has_phantom=has_phantom)

    if has_phantom:
        def in_index(c, i):
            # Clamp phantom tiles onto the last real block; the kernel skips
            # their accumulation, so re-reading that block is harmless.
            return (jnp.minimum(c * tiles_per_shard + i, total_tiles - 1), 0)
    else:
        def in_index(c, i):
            return (c * tiles_per_shard + i, 0)

    in_spec = pl.BlockSpec((tr, _LANES), in_index)
    out_spec = pl.BlockSpec((None, 1, _LANES), lambda c, i: (c, 0, 0))
    part = jax.ShapeDtypeStruct((shards, 1, _LANES), jnp.float32)

    inter_p, total_p, bce_p = pl.pallas_call(
        kernel,
        out_shape=(part, part, part),
        grid=(shards, tiles_per_shard),
        in_specs=[in_spec, in_spec],
        out_specs=(out_spec, out_spec, out_spec),
        compiler_params=pltpu.CompilerParams(
            dimension_semantics=("parallel", "arbitrary")),
    )(x2, t2)

    # Tiny host-side combine over the (shards, 1, 128) partials: the exact
    # correction for the fake zeros, then the IoU/BCE scalar math.
    intersection = jnp.sum(inter_p)
    total = jnp.sum(total_p) - 0.5 * fake
    bce_sum = jnp.sum(bce_p) + _LN2 * fake
    union = total - intersection
    iou = 1.0 - (intersection + smooth) / (union + smooth)
    bce = -bce_sum / n
    return bce + iou


def _reference_loss(logits, targets, smooth=1.0):
    # Pure-JAX replica of the PyTorch module's math (log clamp at -100).
    sig = jax.nn.sigmoid(logits.astype(jnp.float32)).reshape(-1)
    tgt = targets.astype(jnp.float32).reshape(-1)
    inter = jnp.sum(sig * tgt)
    union = jnp.sum(sig + tgt) - inter
    iou = 1.0 - (inter + smooth) / (union + smooth)
    bce = -jnp.mean(
        tgt * jnp.maximum(jnp.log(sig), -100.0)
        + (1.0 - tgt) * jnp.maximum(jnp.log(1.0 - sig), -100.0))
    return bce + iou


if __name__ == "__main__":
    key = jax.random.PRNGKey(0)
    k1, k2, k3, k4, k5, k6 = jax.random.split(key, 6)

    # Segmentation-head sized NCHW logits + binary mask (fast unmasked path).
    B, C, H, W = 2, 4, 16, 16
    logits = jax.random.normal(k1, (B, C, H, W), dtype=jnp.float32)
    targets = jax.random.bernoulli(k2, p=0.3, shape=(B, C, H, W)).astype(jnp.float32)
    loss = iou_bce_loss(logits, targets, smooth=1.0)
    jax.block_until_ready(loss)
    ref = _reference_loss(logits, targets, smooth=1.0)
    assert jnp.allclose(loss, ref, rtol=1e-5, atol=1e-5), (loss, ref)

    # Flat size not a multiple of 128 -> exercises the <128 zero-pad plus the
    # exact padding correction in the combine.
    B2, C2, H2, W2 = 2, 3, 15, 15
    logits2 = jax.random.normal(k3, (B2, C2, H2, W2), dtype=jnp.float32)
    targets2 = jax.random.bernoulli(k4, p=0.3, shape=(B2, C2, H2, W2)).astype(jnp.float32)
    loss2 = iou_bce_loss(logits2, targets2, smooth=1.0)
    jax.block_until_ready(loss2)
    ref2 = _reference_loss(logits2, targets2, smooth=1.0)
    assert jnp.allclose(loss2, ref2, rtol=1e-5, atol=1e-5), (loss2, ref2)

    # Small tile override -> exercises multi-tile streaming, the 2-shard
    # 'parallel' axis, the ragged masked last tile and a phantom tile.
    B3, C3, H3, W3 = 2, 2, 24, 25
    logits3 = jax.random.normal(k5, (B3, C3, H3, W3), dtype=jnp.float32)
    targets3 = jax.random.bernoulli(k6, p=0.3, shape=(B3, C3, H3, W3)).astype(jnp.float32)
    loss3 = iou_bce_loss(logits3, targets3, smooth=1.0, tile_rows=8)
    jax.block_until_ready(loss3)
    ref3 = _reference_loss(logits3, targets3, smooth=1.0)
    assert jnp.allclose(loss3, ref3, rtol=1e-5, atol=1e-5), (loss3, ref3)

    print("KERNEL_OK")
</pallas_src>

<mosaic_0001>
module attributes {stable_mosaic.version = 11 : i64} {
  func.func @_iou_bce_kernel(%arg0: i32, %arg1: i32, %arg2: memref<16x128xf32, #tpu.memory_space<vmem>>, %arg3: memref<16x128xf32, #tpu.memory_space<vmem>>, %arg4: memref<1x1x128xf32, #tpu.memory_space<vmem>>, %arg5: memref<1x1x128xf32, #tpu.memory_space<vmem>>, %arg6: memref<1x1x128xf32, #tpu.memory_space<vmem>>) attributes {dimension_semantics = [#tpu.dimension_semantics<parallel>, #tpu.dimension_semantics<arbitrary>], iteration_bounds = array<i64: 1, 1>, scalar_prefetch = 0 : i64, scratch_operands = 0 : i64, tpu.core_type = #tpu.core_type<tc>, window_params = [{transform_indices = @transform_0, window_bounds = array<i64: 16, 128>}, {transform_indices = @transform_1, window_bounds = array<i64: 16, 128>}, {transform_indices = @transform_2, window_bounds = array<i64: 1, 1, 128>}, {transform_indices = @transform_3, window_bounds = array<i64: 1, 1, 128>}, {transform_indices = @transform_4, window_bounds = array<i64: 1, 1, 128>}]} {
    %c0_i32 = arith.constant 0 : i32
    %0 = arith.cmpi eq, %arg1, %c0_i32 : i32
    %1 = arith.extui %0 : i1 to i32
    %c0_i32_0 = arith.constant 0 : i32
    %2 = arith.cmpi ne, %1, %c0_i32_0 : i32
    scf.if %2 {
      %cst_32 = arith.constant 0.000000e+00 : f32
      %56 = vector.broadcast %cst_32 : f32 to vector<1x128xf32>
      %c0_33 = arith.constant 0 : index
      %c0_34 = arith.constant 0 : index
      %c0_35 = arith.constant 0 : index
      %57 = vector.load %arg4[%c0_33, %c0_34, %c0_35] : memref<1x1x128xf32, #tpu.memory_space<vmem>>, vector<1x1x128xf32>
      %58 = vector.shape_cast %57 : vector<1x1x128xf32> to vector<1x128xf32>
      %59 = vector.shape_cast %56 : vector<1x128xf32> to vector<1x1x128xf32>
      tpu.vector_store %arg4[%c0_33, %c0_34, %c0_35], %59 {strides = array<i32>} : memref<1x1x128xf32, #tpu.memory_space<vmem>>, vector<1x1x128xf32>,
      %cst_36 = arith.constant 0.000000e+00 : f32
      %60 = vector.broadcast %cst_36 : f32 to vector<1x128xf32>
      %c0_37 = arith.constant 0 : index
      %c0_38 = arith.constant 0 : index
      %c0_39 = arith.constant 0 : index
      %61 = vector.load %arg5[%c0_37, %c0_38, %c0_39] : memref<1x1x128xf32, #tpu.memory_space<vmem>>, vector<1x1x128xf32>
      %62 = vector.shape_cast %61 : vector<1x1x128xf32> to vector<1x128xf32>
      %63 = vector.shape_cast %60 : vector<1x128xf32> to vector<1x1x128xf32>
      tpu.vector_store %arg5[%c0_37, %c0_38, %c0_39], %63 {strides = array<i32>} : memref<1x1x128xf32, #tpu.memory_space<vmem>>, vector<1x1x128xf32>,
      %cst_40 = arith.constant 0.000000e+00 : f32
      %64 = vector.broadcast %cst_40 : f32 to vector<1x128xf32>
      %c0_41 = arith.constant 0 : index
      %c0_42 = arith.constant 0 : index
      %c0_43 = arith.constant 0 : index
      %65 = vector.load %arg6[%c0_41, %c0_42, %c0_43] : memref<1x1x128xf32, #tpu.memory_space<vmem>>, vector<1x1x128xf32>
      %66 = vector.shape_cast %65 : vector<1x1x128xf32> to vector<1x128xf32>
      %67 = vector.shape_cast %64 : vector<1x128xf32> to vector<1x1x128xf32>
      tpu.vector_store %arg6[%c0_41, %c0_42, %c0_43], %67 {strides = array<i32>} : memref<1x1x128xf32, #tpu.memory_space<vmem>>, vector<1x1x128xf32>,
    } else {
    }
    %c0 = arith.constant 0 : index
    %c0_1 = arith.constant 0 : index
    %3 = vector.load %arg2[%c0, %c0_1] : memref<16x128xf32, #tpu.memory_space<vmem>>, vector<16x128xf32>
    %c0_2 = arith.constant 0 : index
    %c0_3 = arith.constant 0 : index
    %4 = vector.load %arg3[%c0_2, %c0_3] : memref<16x128xf32, #tpu.memory_space<vmem>>, vector<16x128xf32>
    %cst = arith.constant 0.000000e+00 : f32
    %5 = vector.broadcast %cst : f32 to vector<16x128xf32>
    %6 = arith.maximumf %3, %5 : vector<16x128xf32>
    %cst_4 = arith.constant 2.000000e+00 : f32
    %7 = vector.broadcast %cst_4 : f32 to vector<16x128xf32>
    %8 = arith.mulf %7, %6 : vector<16x128xf32>
    %9 = arith.subf %3, %8 : vector<16x128xf32>
    %10 = math.exp %9 : vector<16x128xf32>
    %cst_5 = arith.constant 1.000000e+00 : f32
    %11 = vector.broadcast %cst_5 : f32 to vector<16x128xf32>
    %12 = arith.addf %11, %10 : vector<16x128xf32>
    %13 = math.log %12 : vector<16x128xf32>
    %14 = arith.addf %6, %13 : vector<16x128xf32>
    %cst_6 = arith.constant 0.000000e+00 : f32
    %15 = vector.broadcast %cst_6 : f32 to vector<16x128xf32>
    %16 = arith.subf %15, %14 : vector<16x128xf32>
    %17 = arith.addf %3, %16 : vector<16x128xf32>
    %18 = math.exp %17 : vector<16x128xf32>
    %cst_7 = arith.constant -1.000000e+02 : f32
    %19 = vector.broadcast %cst_7 : f32 to vector<16x128xf32>
    %20 = arith.maximumf %17, %19 : vector<16x128xf32>
    %cst_8 = arith.constant 1.000000e+00 : f32
    %21 = vector.broadcast %cst_8 : f32 to vector<16x128xf32>
    %22 = arith.cmpf oge, %18, %21 : vector<16x128xf32>
    %cst_9 = arith.constant -1.000000e+02 : f32
    %23 = vector.broadcast %cst_9 : f32 to vector<16x128xf32>
    %24 = arith.maximumf %16, %23 : vector<16x128xf32>
    %cst_10 = arith.constant -1.000000e+02 : f32
    %25 = vector.broadcast %cst_10 : f32 to vector<16x128xf32>
    %26 = arith.select %22, %25, %24 : vector<16x128xi1>, vector<16x128xf32>
    %27 = arith.subf %20, %26 : vector<16x128xf32>
    %28 = arith.mulf %4, %27 : vector<16x128xf32>
    %29 = arith.addf %26, %28 : vector<16x128xf32>
    %c0_11 = arith.constant 0 : index
    %c0_12 = arith.constant 0 : index
    %c0_13 = arith.constant 0 : index
    %30 = vector.load %arg4[%c0_11, %c0_12, %c0_13] : memref<1x1x128xf32, #tpu.memory_space<vmem>>, vector<1x1x128xf32>
    %31 = vector.shape_cast %30 : vector<1x1x128xf32> to vector<1x128xf32>
    %32 = arith.mulf %18, %4 : vector<16x128xf32>
    %cst_14 = arith.constant dense<0.000000e+00> : vector<128xf32>
    %33 = vector.multi_reduction <add>, %32, %cst_14 [0] : vector<16x128xf32> to vector<128xf32>
    %34 = vector.shape_cast %33 : vector<128xf32> to vector<1x128xf32>
    %35 = arith.addf %31, %34 : vector<1x128xf32>
    %c0_15 = arith.constant 0 : index
    %c0_16 = arith.constant 0 : index
    %c0_17 = arith.constant 0 : index
    %36 = vector.load %arg4[%c0_15, %c0_16, %c0_17] : memref<1x1x128xf32, #tpu.memory_space<vmem>>, vector<1x1x128xf32>
    %37 = vector.shape_cast %36 : vector<1x1x128xf32> to vector<1x128xf32>
    %38 = vector.shape_cast %35 : vector<1x128xf32> to vector<1x1x128xf32>
    tpu.vector_store %arg4[%c0_15, %c0_16, %c0_17], %38 {strides = array<i32>} : memref<1x1x128xf32, #tpu.memory_space<vmem>>, vector<1x1x128xf32>,
    %c0_18 = arith.constant 0 : index
    %c0_19 = arith.constant 0 : index
    %c0_20 = arith.constant 0 : index
    %39 = vector.load %arg5[%c0_18, %c0_19, %c0_20] : memref<1x1x128xf32, #tpu.memory_space<vmem>>, vector<1x1x128xf32>
    %40 = vector.shape_cast %39 : vector<1x1x128xf32> to vector<1x128xf32>
    %41 = arith.addf %18, %4 : vector<16x128xf32>
    %cst_21 = arith.constant dense<0.000000e+00> : vector<128xf32>
    %42 = vector.multi_reduction <add>, %41, %cst_21 [0] : vector<16x128xf32> to vector<128xf32>
    %43 = vector.shape_cast %42 : vector<128xf32> to vector<1x128xf32>
    %44 = arith.addf %40, %43 : vector<1x128xf32>
    %c0_22 = arith.constant 0 : index
    %c0_23 = arith.constant 0 : index
    %c0_24 = arith.constant 0 : index
    %45 = vector.load %arg5[%c0_22, %c0_23, %c0_24] : memref<1x1x128xf32, #tpu.memory_space<vmem>>, vector<1x1x128xf32>
    %46 = vector.shape_cast %45 : vector<1x1x128xf32> to vector<1x128xf32>
    %47 = vector.shape_cast %44 : vector<1x128xf32> to vector<1x1x128xf32>
    tpu.vector_store %arg5[%c0_22, %c0_23, %c0_24], %47 {strides = array<i32>} : memref<1x1x128xf32, #tpu.memory_space<vmem>>, vector<1x1x128xf32>,
    %c0_25 = arith.constant 0 : index
    %c0_26 = arith.constant 0 : index
    %c0_27 = arith.constant 0 : index
    %48 = vector.load %arg6[%c0_25, %c0_26, %c0_27] : memref<1x1x128xf32, #tpu.memory_space<vmem>>, vector<1x1x128xf32>
    %49 = vector.shape_cast %48 : vector<1x1x128xf32> to vector<1x128xf32>
    %cst_28 = arith.constant dense<0.000000e+00> : vector<128xf32>
    %50 = vector.multi_reduction <add>, %29, %cst_28 [0] : vector<16x128xf32> to vector<128xf32>
    %51 = vector.shape_cast %50 : vector<128xf32> to vector<1x128xf32>
    %52 = arith.addf %49, %51 : vector<1x128xf32>
    %c0_29 = arith.constant 0 : index
    %c0_30 = arith.constant 0 : index
    %c0_31 = arith.constant 0 : index
    %53 = vector.load %arg6[%c0_29, %c0_30, %c0_31] : memref<1x1x128xf32, #tpu.memory_space<vmem>>, vector<1x1x128xf32>
    %54 = vector.shape_cast %53 : vector<1x1x128xf32> to vector<1x128xf32>
    %55 = vector.shape_cast %52 : vector<1x128xf32> to vector<1x1x128xf32>
    tpu.vector_store %arg6[%c0_29, %c0_30, %c0_31], %55 {strides = array<i32>} : memref<1x1x128xf32, #tpu.memory_space<vmem>>, vector<1x1x128xf32>,
    return
  }
  func.func @transform_0(%arg0: i32, %arg1: i32) -> (i32, i32) {
    %c1_i32 = arith.constant 1 : i32
    %0 = arith.muli %arg0, %c1_i32 : i32
    %1 = arith.addi %0, %arg1 : i32
    %c0_i32 = arith.constant 0 : i32
    %c0_i32_0 = arith.constant 0 : i32
    return %1, %c0_i32 : i32, i32
  }
  func.func @transform_1(%arg0: i32, %arg1: i32) -> (i32, i32) {
    %c1_i32 = arith.constant 1 : i32
    %0 = arith.muli %arg0, %c1_i32 : i32
    %1 = arith.addi %0, %arg1 : i32
    %c0_i32 = arith.constant 0 : i32
    %c0_i32_0 = arith.constant 0 : i32
    return %1, %c0_i32 : i32, i32
  }
  func.func @transform_2(%arg0: i32, %arg1: i32) -> (i32, i32, i32) {
    %c0_i32 = arith.constant 0 : i32
    %c0_i32_0 = arith.constant 0 : i32
    %c0_i32_1 = arith.constant 0 : i32
    return %arg0, %c0_i32, %c0_i32_0 : i32, i32, i32
  }
  func.func @transform_3(%arg0: i32, %arg1: i32) -> (i32, i32, i32) {
    %c0_i32 = arith.constant 0 : i32
    %c0_i32_0 = arith.constant 0 : i32
    %c0_i32_1 = arith.constant 0 : i32
    return %arg0, %c0_i32, %c0_i32_0 : i32, i32, i32
  }
  func.func @transform_4(%arg0: i32, %arg1: i32) -> (i32, i32, i32) {
    %c0_i32 = arith.constant 0 : i32
    %c0_i32_0 = arith.constant 0 : i32
    %c0_i32_1 = arith.constant 0 : i32
    return %arg0, %c0_i32, %c0_i32_0 : i32, i32, i32
  }
}

</mosaic_0001>

<bundles_post_ra>
// kernel: tpu_custom_call.1
= control target key start
LH: loop header
LB: loop body
LE: loop exit
PB: predicated region body
PF: predicated region fallthrough
CT: control target
= control target key end

     0   :  { %10 = vsyncpa [#allocation3], 0  ;;  %s390_s0 = inlined_call_operand.hbm [shape: f32[16,128], index: 0, kind: input, shape index: {}]   ;;  %s391_s1 = inlined_call_operand.hbm [shape: f32[16,128], index: 1, kind: input, shape index: {}]   ;;  %s392_s2 = inlined_call_operand.hbm [shape: f32[1,1,128], index: 2, kind: output, shape index: {0}]   ;;  %s393_s3 = inlined_call_operand.hbm [shape: f32[1,1,128], index: 3, kind: output, shape index: {1}]   ;;  %s394_s4 = inlined_call_operand.hbm [shape: f32[1,1,128], index: 4, kind: output, shape index: {2}]  }
   0x1   :  { %11 = vsyncpa [#allocation6], 0 }
   0x2   :  { %12 = vsyncpa [#allocation4], 0 }
   0x3   :  { %13 = vsyncpa [#allocation9], 0  ;;  %s22_s17 = sshll.u32 %s390_s0, 4  ;;  %s342_s18 = smov [#allocation2]   ;;  %s23_s17 = int_to_ptr.hbm [resolvable:$true] %s22_s17 }
   0x4   :  { %s24_s19 = sshll.u32 %s342_s18, 4  ;;  %s39_s22 = sshll.u32 %s391_s1, 4  ;;  %s25_s19 = int_to_ptr.vmem [resolvable:$true] %s24_s19  ;;  %s40_s22 = int_to_ptr.hbm [resolvable:$true] %s39_s22 }
   0x5   :  { %s343_s23 = smov 128   ;;  %s344_s24 = smov 8  }
   0x6   :  { %30 = dma.hbm_to_vmem [thread:$0]  %s23_s17, 256, %s25_s19, [#allocation3], %s343_s23, %s343_s23, %s344_s24  }
   0x7   :  { %s345_s25 = smov [#allocation5]  }
   0x8   :  { %s41_s26 = sshll.u32 %s345_s25, 4  ;;  %s42_s26 = int_to_ptr.vmem [resolvable:$true] %s41_s26 }
   0x9   :  { %47 = dma.hbm_to_vmem [thread:$0]  %s40_s22, 256, %s42_s26, [#allocation6], %s343_s23, %s343_s23, %s344_s24  }
   0xa   :  { %334 = dma.done.wait [#allocation3], 256  }
   0xb   :  { %335 = vsyncadd [#allocation3], 4294967040 }
   0xc   :  { %336 = dma.done.wait [#allocation6], 256  }
   0xd   :  { %337 = vsyncadd [#allocation6], 4294967040  ;;  %v346_v0 = vmov 0.0   ;;  %v67_v1 = vld [vmem:[#allocation2] sm:$0xff]  ;;  %v68_v2 = vld [vmem:[#allocation2 + $0x8] sm:$0xff]  ;;  %s347_s0 = smov [#allocation8]  }
   0xe   :  { %65 = vst [vmem:[#allocation8] sm:$0x1] %v346_v0  ;;  %v71_v3 = vmax.f32 %v67_v1, 0.0  ;;  %v72_v4 = vmax.f32 %v68_v2, 0.0  ;;  %v69_v27 = vld [vmem:[#allocation5] sm:$0xff]  ;;  %v70_v29 = vld [vmem:[#allocation5 + $0x8] sm:$0xff] }
   0xf   :  { %64 = vst [vmem:[#allocation7] sm:$0x1] %v346_v0  ;;  %s161_s1 = sshll.u32 %s347_s0, 4  ;;  %s163_s29 = sshll.u32 %s393_s3, 4  ;;  %s162_s1 = int_to_ptr.vmem [resolvable:$true] %s161_s1  ;;  %s164_s29 = int_to_ptr.hbm [resolvable:$true] %s163_s29 }
  0x10   :  { %66 = vst [vmem:[#allocation10] sm:$0x1] %v346_v0  ;;  %v73_v5 = vmul.f32 2.0, %v71_v3  ;;  %v74_v6 = vmul.f32 2.0, %v72_v4  ;;  %s348_s30 = smov [#allocation7]   ;;  %s152_s8 = sshll.u32 %s392_s2, 4  ;;  %s153_s8 = int_to_ptr.hbm [resolvable:$true] %s152_s8 }
  0x11   :  { %s150_s5 = sshll.u32 %s348_s30, 4  ;;  %s349_s9 = smov [#allocation10]   ;;  %s151_s5 = int_to_ptr.vmem [resolvable:$true] %s150_s5 }
  0x12   :  { %v75_v7 = vsub.f32 %v67_v1, %v73_v5  ;;  %v76_v8 = vsub.f32 %v68_v2, %v74_v6  ;;  %s172_s3 = sshll.u32 %s349_s9, 4  ;;  %s174_s12 = sshll.u32 %s394_s4, 4  ;;  %s173_s3 = int_to_ptr.vmem [resolvable:$true] %s172_s3  ;;  %s175_s12 = int_to_ptr.hbm [resolvable:$true] %s174_s12 }
  0x14   :  { %v77_v9 = vmul.f32 1.442695, %v75_v7  ;;  %v79_v10 = vmul.f32 1.442695, %v76_v8 }
  0x15   :  { %v123_v62 = vld [vmem:[#allocation8] sm:$0x1] }
  0x16   :  { %202 = vpow2.f32 %v77_v9  ;;  %v111_v63 = vld [vmem:[#allocation7] sm:$0x1] }
  0x17   :  { %204 = vpow2.f32 %v79_v10  ;;  %v135_v7 = vld [vmem:[#allocation10] sm:$0x1] }
  0x1c   :  { %v203_v11 = vpop.eup %202 }
  0x1d   :  { %v205_v12 = vpop.eup %204  ;;  %v81_v13 = vadd.f32 1.0, %v203_v11 }
  0x1e   :  { %v82_v14 = vadd.f32 1.0, %v205_v12 }
  0x1f   :  { %206 = vlog2.f32 %v81_v13 }
  0x20   :  { %208 = vlog2.f32 %v82_v14 }
  0x25   :  { %v207_v15 = vpop.eup %206 }
  0x26   :  { %v209_v16 = vpop.eup %208  ;;  %v84_v17 = vmul.f32 0.6931472, %v207_v15 }
  0x27   :  { %v86_v18 = vmul.f32 0.6931472, %v209_v16 }
  0x28   :  { %v87_v19 = vadd.f32 %v84_v17, %v71_v3 }
  0x29   :  { %v88_v20 = vadd.f32 %v86_v18, %v72_v4 }
  0x2a   :  { %v89_v21 = vsub.f32 0.0, %v87_v19 }
  0x2b   :  { %v90_v22 = vsub.f32 0.0, %v88_v20 }
  0x2c   :  { %v91_v23 = vadd.f32 %v89_v21, %v67_v1  ;;  %v101_v28 = vmax.f32 %v89_v21, -100.0 }
  0x2d   :  { %v92_v24 = vadd.f32 %v90_v22, %v68_v2  ;;  %v102_v31 = vmax.f32 %v90_v22, -100.0 }
  0x2e   :  { %v93_v25 = vmul.f32 1.442695, %v91_v23  ;;  %v97_v30 = vmax.f32 %v91_v23, -100.0 }
  0x2f   :  { %v95_v26 = vmul.f32 1.442695, %v92_v24  ;;  %v98_v33 = vmax.f32 %v92_v24, -100.0 }
  0x30   :  { %210 = vpow2.f32 %v93_v25 }
  0x31   :  { %212 = vpow2.f32 %v95_v26 }
  0x36   :  { %v211_v32 = vpop.eup %210 }
  0x37   :  { %v213_v34 = vpop.eup %212  ;;  %v124_v35 = vadd.f32 %v211_v32, %v69_v27  ;;  %v112_v36 = vmul.f32 %v211_v32, %v69_v27  ;;  %vm99_vm0 = vcmp.ge.f32.partialorder %v211_v32, 1.0 }
  0x38   :  { %v125_v37 = vadd.f32 %v213_v34, %v70_v29  ;;  %v113_v38 = vmul.f32 %v213_v34, %v70_v29  ;;  %vm100_vm1 = vcmp.ge.f32.partialorder %v213_v34, 1.0  ;;  %v103_v39 = vsel %vm99_vm0, -100.0, %v101_v28 }
  0x39   :  { %v104_v40 = vsel %vm100_vm1, -100.0, %v102_v31  ;;  %v105_v41 = vsub.f32 %v97_v30, %v103_v39 }
  0x3a   :  { %v126_v42 = vadd.f32 %v125_v37, %v124_v35  ;;  %v114_v43 = vadd.f32 %v113_v38, %v112_v36  ;;  %v106_v44 = vsub.f32 %v98_v33, %v104_v40 }
  0x3b   :  { %v107_v45 = vmul.f32 %v105_v41, %v69_v27 }
  0x3c   :  { %v127_v46 = vrot.slane %v126_v42, 4  ;;  %v115_v47 = vrot.slane %v114_v43, 4  ;;  %v108_v48 = vmul.f32 %v106_v44, %v70_v29 }
  0x3d   :  { %v109_v49 = vadd.f32 %v107_v45, %v103_v39 }
  0x3e   :  { %v128_v50 = vadd.f32 %v127_v46, %v126_v42  ;;  %v116_v51 = vadd.f32 %v115_v47, %v114_v43  ;;  %v110_v52 = vadd.f32 %v108_v48, %v104_v40 }
  0x40   :  { %v129_v53 = vrot.slane %v128_v50, 2  ;;  %v117_v54 = vrot.slane %v116_v51, 2  ;;  %v136_v55 = vadd.f32 %v110_v52, %v109_v49 }
  0x42   :  { %v130_v56 = vadd.f32 %v129_v53, %v128_v50  ;;  %v118_v57 = vadd.f32 %v117_v54, %v116_v51  ;;  %v137_v58 = vrot.slane %v136_v55, 4 }
  0x44   :  { %v131_v59 = vrot.slane %v130_v56, 1  ;;  %v119_v60 = vrot.slane %v118_v57, 1  ;;  %v138_v61 = vadd.f32 %v137_v58, %v136_v55 }
  0x46   :  { %v132_v0 = vadd.f32 %v131_v59, %v130_v56  ;;  %v120_v1 = vadd.f32 %v119_v60, %v118_v57  ;;  %v139_v2 = vrot.slane %v138_v61, 2 }
  0x48   :  { %v133_v3 = vadd.f32 %v132_v0, %v123_v62  ;;  %v121_v4 = vadd.f32 %v120_v1, %v111_v63  ;;  %v140_v5 = vadd.f32 %v139_v2, %v138_v61 }
  0x4a   :  { %134 = vst [vmem:[#allocation8] sm:$0x1] %v133_v3  ;;  %v141_v6 = vrot.slane %v140_v5, 1 }
  0x4b   :  { %122 = vst [vmem:[#allocation7] sm:$0x1] %v121_v4  ;;  %166 = dma.vmem_to_hbm [thread:$0]  %s162_s1, 16, %s164_s29, [#allocation9]  }
  0x4c   :  { %v142_v8 = vadd.f32 %v141_v6, %v140_v5  ;;  %155 = dma.vmem_to_hbm [thread:$0]  %s151_s5, 16, %s153_s8, [#allocation4]  }
  0x4e   :  { %v143_v9 = vadd.f32 %v142_v8, %v135_v7 }
  0x50   :  { %144 = vst [vmem:[#allocation10] sm:$0x1] %v143_v9 }
  0x51   :  { %177 = dma.vmem_to_hbm [thread:$0]  %s173_s3, 16, %s175_s12, [#allocation9]  }
  0x52   :  { %338 = dma.done.wait [#allocation4], 16  }
  0x53   :  { %339 = vsyncadd [#allocation4], 4294967280 }
  0x54   :  { %340 = dma.done.wait [#allocation9], 32  }
  0x55   :  { %341 = vsyncadd [#allocation9], 4294967264 }
  0x56   :  { %190 = vsyncpa [#allocation3], 1 }
  0x57   :  { %191 = vsyncpa [#allocation6], 1 }
  0x58   :  { %192 = vsyncpa [#allocation4], 1 }
  0x59   :  { %193 = vsyncpa [#allocation9], 1 }

</bundles_post_ra>
